<compile_context>
chip_gen: v7x
topology: tpu7x:2x2x1
jax: 0.10.0
libtpu: 0.0.40
codegen_flags: <defaults>
</compile_context>

<pallas_src>
import functools

import jax
import jax.numpy as jnp
from jax.experimental import pallas as pl
from jax.experimental.pallas import tpu as pltpu


_OUT_PAD = 128  # pad readout output to a lane-dense width, sliced back to 1 outside
_VMEM_SPEC = pl.BlockSpec(memory_space=pltpu.VMEM)


# ----------------------------------------------------------------------------
# Fused Pallas kernel: all GIN layers + pooling + readout head in one body.
# ----------------------------------------------------------------------------
def make_fused_gin_kernel(num_layers):
    """Build a kernel closed over the (static) layer count.

    Ref layout (all VMEM):
      adj_ref : [L, N, N]  per-layer adjacency with (1+eps_l)*I folded in
      x_ref   : [N, Fin]   input node features
      per layer l: w1, b1, w2, b2, bn_scale, bn_shift
      pool_ref : [G, N]    global_mean_pool matrix
      l1w, l1b, l2w, l2b   readout head (l2* padded to _OUT_PAD lanes)
      out_ref : [G, _OUT_PAD]
    """
    per = 6

    def kernel(adj_ref, x_ref, *refs):
        layer_refs = refs[: num_layers * per]
        pool_ref, l1w_ref, l1b_ref, l2w_ref, l2b_ref, out_ref = refs[num_layers * per:]

        h = x_ref[...]                                                    # [N, Fin]
        for l in range(num_layers):                                        # static unroll
            w1, b1, w2, b2, scale, shift = layer_refs[l * per:(l + 1) * per]
            # GINConv aggregation: (A + (1+eps) I) @ h  -> MXU
            agg = jnp.dot(adj_ref[l], h, preferred_element_type=jnp.float32)
            # MLP: Linear -> ReLU -> Linear -> ReLU
            h = jnp.dot(agg, w1[...], preferred_element_type=jnp.float32) + b1[...]
            h = jnp.maximum(h, 0.0)
            h = jnp.dot(h, w2[...], preferred_element_type=jnp.float32) + b2[...]
            h = jnp.maximum(h, 0.0)
            # BatchNorm1d (eval), pre-folded to affine: h * scale + shift
            h = h * scale[...] + shift[...]

        # global_mean_pool as matmul, then Linear -> ReLU -> (dropout: identity) -> Linear
        pooled = jnp.dot(pool_ref[...], h, preferred_element_type=jnp.float32)   # [G, H]
        r = jnp.dot(pooled, l1w_ref[...], preferred_element_type=jnp.float32) + l1b_ref[...]
        r = jnp.maximum(r, 0.0)
        # TODO(synk): dropout p=0.5 skipped because forward is evaluated in eval mode.
        out_ref[...] = jnp.dot(r, l2w_ref[...], preferred_element_type=jnp.float32) + l2b_ref[...]

    return kernel


# ----------------------------------------------------------------------------
# Parameter init (synthetic, matching the PyTorch module shapes)
# ----------------------------------------------------------------------------
def init_params(key, num_features, hidden, num_layers):
    params = {"convs": []}
    dims_in = [num_features] + [hidden] * (num_layers - 1)
    for li, fin in enumerate(dims_in):
        key, *ks = jax.random.split(key, 10)
        layer = {
            "eps": jnp.zeros((1,), jnp.float32) + 0.1 * (li + 1),
            "w1": 0.1 * jax.random.normal(ks[0], (fin, hidden), jnp.float32),
            "b1": 0.05 * jax.random.normal(ks[1], (1, hidden), jnp.float32),
            "w2": 0.1 * jax.random.normal(ks[2], (hidden, hidden), jnp.float32),
            "b2": 0.05 * jax.random.normal(ks[3], (1, hidden), jnp.float32),
            "gamma": 1.0 + 0.1 * jax.random.normal(ks[4], (1, hidden), jnp.float32),
            "beta": 0.1 * jax.random.normal(ks[5], (1, hidden), jnp.float32),
            "mean": 0.1 * jax.random.normal(ks[6], (1, hidden), jnp.float32),
            "var": 1.0 + 0.1 * jax.random.uniform(ks[7], (1, hidden), jnp.float32),
        }
        params["convs"].append(layer)
    key, k1, k2, k3, k4 = jax.random.split(key, 5)
    params["lin1_w"] = 0.1 * jax.random.normal(k1, (hidden, hidden), jnp.float32)
    params["lin1_b"] = 0.05 * jax.random.normal(k2, (1, hidden), jnp.float32)
    params["lin2_w"] = 0.1 * jax.random.normal(k3, (hidden, 1), jnp.float32)
    params["lin2_b"] = 0.05 * jax.random.normal(k4, (1, 1), jnp.float32)
    return params


# ----------------------------------------------------------------------------
# Plain-JAX preprocessing (adjacency / pooling matrices, BN folding)
# ----------------------------------------------------------------------------
def build_dense_adjacency(edge_index, num_nodes):
    """A[i, j] = #edges (j -> i); GINConv sums source features into targets."""
    src, dst = edge_index[0], edge_index[1]
    adj = jnp.zeros((num_nodes, num_nodes), jnp.float32)
    return adj.at[dst, src].add(1.0)


def build_pool_matrix(batch_index, num_graphs, num_nodes):
    """P[g, n] = 1/|V_g| if node n belongs to graph g (global_mean_pool)."""
    one_hot = (batch_index[None, :] == jnp.arange(num_graphs)[:, None]).astype(jnp.float32)
    counts = jnp.maximum(one_hot.sum(axis=1, keepdims=True), 1.0)
    return one_hot / counts


@functools.partial(jax.jit, static_argnames=("num_graphs",))
def gin_forward(params, x, edge_index, batch_index, num_graphs):
    n = x.shape[0]
    hidden = params["lin1_w"].shape[0]
    num_layers = len(params["convs"])

    adj = build_dense_adjacency(edge_index, n)
    eye = jnp.eye(n, dtype=jnp.float32)
    # Fold (1 + eps_l) * x self-term into the adjacency, per layer.
    adj_eps = jnp.stack(
        [adj + (1.0 + layer["eps"][0]) * eye for layer in params["convs"]], axis=0)
    pool_mat = build_pool_matrix(batch_index, num_graphs, n)

    # Fold BatchNorm (eval) into an affine per layer.
    layer_args = []
    for layer in params["convs"]:
        scale = layer["gamma"] * jax.lax.rsqrt(layer["var"] + 1e-5)
        shift = layer["beta"] - layer["mean"] * scale
        layer_args += [layer["w1"], layer["b1"], layer["w2"], layer["b2"], scale, shift]

    # Pad the 1-wide readout head to 128 lanes for a lane-dense output store.
    lin2_w = jnp.zeros((hidden, _OUT_PAD), jnp.float32).at[:, :1].set(params["lin2_w"])
    lin2_b = jnp.zeros((1, _OUT_PAD), jnp.float32).at[:, :1].set(params["lin2_b"])

    args = ([adj_eps, x.astype(jnp.float32)] + layer_args +
            [pool_mat, params["lin1_w"], params["lin1_b"], lin2_w, lin2_b])

    kernel = make_fused_gin_kernel(num_layers)
    out_padded = pl.pallas_call(
        kernel,
        out_shape=jax.ShapeDtypeStruct((num_graphs, _OUT_PAD), jnp.float32),
        in_specs=[_VMEM_SPEC] * len(args),
        out_specs=_VMEM_SPEC,
    )(*args)
    return out_padded[:, :1]  # [num_graphs, 1]


# ----------------------------------------------------------------------------
# Main
# ----------------------------------------------------------------------------
if __name__ == "__main__":
    NUM_FEATURES = 8
    HIDDEN = 32
    NUM_LAYERS = 3
    NUM_NODES = 16          # 2 graphs of 8 nodes each
    NUM_GRAPHS = 2

    key = jax.random.PRNGKey(0)
    key, kx = jax.random.split(key)

    # Node features
    x = jax.random.normal(kx, (NUM_NODES, NUM_FEATURES), jnp.float32)

    # Two ring graphs (bidirectional edges), nodes 0..7 and 8..15
    edges = []
    for g in range(NUM_GRAPHS):
        base = g * 8
        for i in range(8):
            a, b = base + i, base + (i + 1) % 8
            edges.append((a, b))
            edges.append((b, a))
    edge_index = jnp.array(edges, dtype=jnp.int32).T                     # [2, 32]
    batch_index = jnp.repeat(jnp.arange(NUM_GRAPHS, dtype=jnp.int32), 8)  # [16]

    params = init_params(key, NUM_FEATURES, HIDDEN, NUM_LAYERS)

    out = gin_forward(params, x, edge_index, batch_index, NUM_GRAPHS)
    out = jax.block_until_ready(out)
    assert out.shape == (NUM_GRAPHS, 1)
    assert jnp.all(jnp.isfinite(out))
    print("KERNEL_OK")
</pallas_src>

<mosaic_0001>
module attributes {stable_mosaic.version = 11 : i64} {
  func.func private @main(%arg0: i32) attributes {dimension_semantics = [#tpu.dimension_semantics<core_parallel>], iteration_bounds = array<i64: 2>, tpu.core_type = #tpu.core_type<sc_scalar_subcore>, window_params = []} {
    return
  }
}

module attributes {stable_mosaic.version = 11 : i64} {
  func.func private @main(%arg0: i32) attributes {dimension_semantics = [#tpu.dimension_semantics<core_parallel>], iteration_bounds = array<i64: 2>, tpu.core_type = #tpu.core_type<sc_scalar_subcore>, window_params = []} {
    return
  }
}

module attributes {stable_mosaic.version = 11 : i64} {
  func.func @kernel(%arg0: memref<3x16x16xf32, #tpu.memory_space<vmem>>, %arg1: memref<16x8xf32, #tpu.memory_space<vmem>>, %arg2: memref<8x32xf32, #tpu.memory_space<vmem>>, %arg3: memref<1x32xf32, #tpu.memory_space<vmem>>, %arg4: memref<32x32xf32, #tpu.memory_space<vmem>>, %arg5: memref<1x32xf32, #tpu.memory_space<vmem>>, %arg6: memref<1x32xf32, #tpu.memory_space<vmem>>, %arg7: memref<1x32xf32, #tpu.memory_space<vmem>>, %arg8: memref<32x32xf32, #tpu.memory_space<vmem>>, %arg9: memref<1x32xf32, #tpu.memory_space<vmem>>, %arg10: memref<32x32xf32, #tpu.memory_space<vmem>>, %arg11: memref<1x32xf32, #tpu.memory_space<vmem>>, %arg12: memref<1x32xf32, #tpu.memory_space<vmem>>, %arg13: memref<1x32xf32, #tpu.memory_space<vmem>>, %arg14: memref<32x32xf32, #tpu.memory_space<vmem>>, %arg15: memref<1x32xf32, #tpu.memory_space<vmem>>, %arg16: memref<32x32xf32, #tpu.memory_space<vmem>>, %arg17: memref<1x32xf32, #tpu.memory_space<vmem>>, %arg18: memref<1x32xf32, #tpu.memory_space<vmem>>, %arg19: memref<1x32xf32, #tpu.memory_space<vmem>>, %arg20: memref<2x16xf32, #tpu.memory_space<vmem>>, %arg21: memref<32x32xf32, #tpu.memory_space<vmem>>, %arg22: memref<1x32xf32, #tpu.memory_space<vmem>>, %arg23: memref<32x128xf32, #tpu.memory_space<vmem>>, %arg24: memref<1x128xf32, #tpu.memory_space<vmem>>, %arg25: memref<2x128xf32, #tpu.memory_space<vmem>>) attributes {dimension_semantics = [], scalar_prefetch = 0 : i64, scratch_operands = 0 : i64, tpu.core_type = #tpu.core_type<tc>} {
    %c0 = arith.constant 0 : index
    %c0_0 = arith.constant 0 : index
    %0 = vector.load %arg1[%c0, %c0_0] : memref<16x8xf32, #tpu.memory_space<vmem>>, vector<16x8xf32>
    %c0_1 = arith.constant 0 : index
    %c0_2 = arith.constant 0 : index
    %c0_3 = arith.constant 0 : index
    %1 = vector.load %arg0[%c0_1, %c0_2, %c0_3] : memref<3x16x16xf32, #tpu.memory_space<vmem>>, vector<1x16x16xf32>
    %2 = vector.shape_cast %1 : vector<1x16x16xf32> to vector<16x16xf32>
    %cst = arith.constant dense<0.000000e+00> : vector<16x8xf32>
    %3 = tpu.matmul %2, %0, %cst {dimension_numbers = #tpu.dot_dimension_numbers<[1], [0], [0], [1], [0, 0, 1, 1], [], []>} : vector<16x16xf32>, vector<16x8xf32>, vector<16x8xf32> -> vector<16x8xf32>
    %c0_4 = arith.constant 0 : index
    %c0_5 = arith.constant 0 : index
    %4 = vector.load %arg2[%c0_4, %c0_5] : memref<8x32xf32, #tpu.memory_space<vmem>>, vector<8x32xf32>
    %cst_6 = arith.constant dense<0.000000e+00> : vector<16x32xf32>
    %5 = tpu.matmul %3, %4, %cst_6 {dimension_numbers = #tpu.dot_dimension_numbers<[1], [0], [0], [1], [0, 0, 1, 1], [], []>} : vector<16x8xf32>, vector<8x32xf32>, vector<16x32xf32> -> vector<16x32xf32>
    %c0_7 = arith.constant 0 : index
    %c0_8 = arith.constant 0 : index
    %6 = vector.load %arg3[%c0_7, %c0_8] : memref<1x32xf32, #tpu.memory_space<vmem>>, vector<1x32xf32>
    %7 = vector.broadcast %6 : vector<1x32xf32> to vector<16x32xf32>
    %8 = arith.addf %5, %7 : vector<16x32xf32>
    %cst_9 = arith.constant 0.000000e+00 : f32
    %9 = vector.broadcast %cst_9 : f32 to vector<16x32xf32>
    %10 = arith.maximumf %8, %9 : vector<16x32xf32>
    %c0_10 = arith.constant 0 : index
    %c0_11 = arith.constant 0 : index
    %11 = vector.load %arg4[%c0_10, %c0_11] : memref<32x32xf32, #tpu.memory_space<vmem>>, vector<32x32xf32>
    %cst_12 = arith.constant dense<0.000000e+00> : vector<16x32xf32>
    %12 = tpu.matmul %10, %11, %cst_12 {dimension_numbers = #tpu.dot_dimension_numbers<[1], [0], [0], [1], [0, 0, 1, 1], [], []>} : vector<16x32xf32>, vector<32x32xf32>, vector<16x32xf32> -> vector<16x32xf32>
    %c0_13 = arith.constant 0 : index
    %c0_14 = arith.constant 0 : index
    %13 = vector.load %arg5[%c0_13, %c0_14] : memref<1x32xf32, #tpu.memory_space<vmem>>, vector<1x32xf32>
    %14 = vector.broadcast %13 : vector<1x32xf32> to vector<16x32xf32>
    %15 = arith.addf %12, %14 : vector<16x32xf32>
    %cst_15 = arith.constant 0.000000e+00 : f32
    %16 = vector.broadcast %cst_15 : f32 to vector<16x32xf32>
    %17 = arith.maximumf %15, %16 : vector<16x32xf32>
    %c0_16 = arith.constant 0 : index
    %c0_17 = arith.constant 0 : index
    %18 = vector.load %arg6[%c0_16, %c0_17] : memref<1x32xf32, #tpu.memory_space<vmem>>, vector<1x32xf32>
    %19 = vector.broadcast %18 : vector<1x32xf32> to vector<16x32xf32>
    %20 = arith.mulf %17, %19 : vector<16x32xf32>
    %c0_18 = arith.constant 0 : index
    %c0_19 = arith.constant 0 : index
    %21 = vector.load %arg7[%c0_18, %c0_19] : memref<1x32xf32, #tpu.memory_space<vmem>>, vector<1x32xf32>
    %22 = vector.broadcast %21 : vector<1x32xf32> to vector<16x32xf32>
    %23 = arith.addf %20, %22 : vector<16x32xf32>
    %c1 = arith.constant 1 : index
    %c0_20 = arith.constant 0 : index
    %c0_21 = arith.constant 0 : index
    %24 = vector.load %arg0[%c1, %c0_20, %c0_21] : memref<3x16x16xf32, #tpu.memory_space<vmem>>, vector<1x16x16xf32>
    %25 = vector.shape_cast %24 : vector<1x16x16xf32> to vector<16x16xf32>
    %cst_22 = arith.constant dense<0.000000e+00> : vector<16x32xf32>
    %26 = tpu.matmul %25, %23, %cst_22 {dimension_numbers = #tpu.dot_dimension_numbers<[1], [0], [0], [1], [0, 0, 1, 1], [], []>} : vector<16x16xf32>, vector<16x32xf32>, vector<16x32xf32> -> vector<16x32xf32>
    %c0_23 = arith.constant 0 : index
    %c0_24 = arith.constant 0 : index
    %27 = vector.load %arg8[%c0_23, %c0_24] : memref<32x32xf32, #tpu.memory_space<vmem>>, vector<32x32xf32>
    %cst_25 = arith.constant dense<0.000000e+00> : vector<16x32xf32>
    %28 = tpu.matmul %26, %27, %cst_25 {dimension_numbers = #tpu.dot_dimension_numbers<[1], [0], [0], [1], [0, 0, 1, 1], [], []>} : vector<16x32xf32>, vector<32x32xf32>, vector<16x32xf32> -> vector<16x32xf32>
    %c0_26 = arith.constant 0 : index
    %c0_27 = arith.constant 0 : index
    %29 = vector.load %arg9[%c0_26, %c0_27] : memref<1x32xf32, #tpu.memory_space<vmem>>, vector<1x32xf32>
    %30 = vector.broadcast %29 : vector<1x32xf32> to vector<16x32xf32>
    %31 = arith.addf %28, %30 : vector<16x32xf32>
    %cst_28 = arith.constant 0.000000e+00 : f32
    %32 = vector.broadcast %cst_28 : f32 to vector<16x32xf32>
    %33 = arith.maximumf %31, %32 : vector<16x32xf32>
    %c0_29 = arith.constant 0 : index
    %c0_30 = arith.constant 0 : index
    %34 = vector.load %arg10[%c0_29, %c0_30] : memref<32x32xf32, #tpu.memory_space<vmem>>, vector<32x32xf32>
    %cst_31 = arith.constant dense<0.000000e+00> : vector<16x32xf32>
    %35 = tpu.matmul %33, %34, %cst_31 {dimension_numbers = #tpu.dot_dimension_numbers<[1], [0], [0], [1], [0, 0, 1, 1], [], []>} : vector<16x32xf32>, vector<32x32xf32>, vector<16x32xf32> -> vector<16x32xf32>
    %c0_32 = arith.constant 0 : index
    %c0_33 = arith.constant 0 : index
    %36 = vector.load %arg11[%c0_32, %c0_33] : memref<1x32xf32, #tpu.memory_space<vmem>>, vector<1x32xf32>
    %37 = vector.broadcast %36 : vector<1x32xf32> to vector<16x32xf32>
    %38 = arith.addf %35, %37 : vector<16x32xf32>
    %cst_34 = arith.constant 0.000000e+00 : f32
    %39 = vector.broadcast %cst_34 : f32 to vector<16x32xf32>
    %40 = arith.maximumf %38, %39 : vector<16x32xf32>
    %c0_35 = arith.constant 0 : index
    %c0_36 = arith.constant 0 : index
    %41 = vector.load %arg12[%c0_35, %c0_36] : memref<1x32xf32, #tpu.memory_space<vmem>>, vector<1x32xf32>
    %42 = vector.broadcast %41 : vector<1x32xf32> to vector<16x32xf32>
    %43 = arith.mulf %40, %42 : vector<16x32xf32>
    %c0_37 = arith.constant 0 : index
    %c0_38 = arith.constant 0 : index
    %44 = vector.load %arg13[%c0_37, %c0_38] : memref<1x32xf32, #tpu.memory_space<vmem>>, vector<1x32xf32>
    %45 = vector.broadcast %44 : vector<1x32xf32> to vector<16x32xf32>
    %46 = arith.addf %43, %45 : vector<16x32xf32>
    %c2 = arith.constant 2 : index
    %c0_39 = arith.constant 0 : index
    %c0_40 = arith.constant 0 : index
    %47 = vector.load %arg0[%c2, %c0_39, %c0_40] : memref<3x16x16xf32, #tpu.memory_space<vmem>>, vector<1x16x16xf32>
    %48 = vector.shape_cast %47 : vector<1x16x16xf32> to vector<16x16xf32>
    %cst_41 = arith.constant dense<0.000000e+00> : vector<16x32xf32>
    %49 = tpu.matmul %48, %46, %cst_41 {dimension_numbers = #tpu.dot_dimension_numbers<[1], [0], [0], [1], [0, 0, 1, 1], [], []>} : vector<16x16xf32>, vector<16x32xf32>, vector<16x32xf32> -> vector<16x32xf32>
    %c0_42 = arith.constant 0 : index
    %c0_43 = arith.constant 0 : index
    %50 = vector.load %arg14[%c0_42, %c0_43] : memref<32x32xf32, #tpu.memory_space<vmem>>, vector<32x32xf32>
    %cst_44 = arith.constant dense<0.000000e+00> : vector<16x32xf32>
    %51 = tpu.matmul %49, %50, %cst_44 {dimension_numbers = #tpu.dot_dimension_numbers<[1], [0], [0], [1], [0, 0, 1, 1], [], []>} : vector<16x32xf32>, vector<32x32xf32>, vector<16x32xf32> -> vector<16x32xf32>
    %c0_45 = arith.constant 0 : index
    %c0_46 = arith.constant 0 : index
    %52 = vector.load %arg15[%c0_45, %c0_46] : memref<1x32xf32, #tpu.memory_space<vmem>>, vector<1x32xf32>
    %53 = vector.broadcast %52 : vector<1x32xf32> to vector<16x32xf32>
    %54 = arith.addf %51, %53 : vector<16x32xf32>
    %cst_47 = arith.constant 0.000000e+00 : f32
    %55 = vector.broadcast %cst_47 : f32 to vector<16x32xf32>
    %56 = arith.maximumf %54, %55 : vector<16x32xf32>
    %c0_48 = arith.constant 0 : index
    %c0_49 = arith.constant 0 : index
    %57 = vector.load %arg16[%c0_48, %c0_49] : memref<32x32xf32, #tpu.memory_space<vmem>>, vector<32x32xf32>
    %cst_50 = arith.constant dense<0.000000e+00> : vector<16x32xf32>
    %58 = tpu.matmul %56, %57, %cst_50 {dimension_numbers = #tpu.dot_dimension_numbers<[1], [0], [0], [1], [0, 0, 1, 1], [], []>} : vector<16x32xf32>, vector<32x32xf32>, vector<16x32xf32> -> vector<16x32xf32>
    %c0_51 = arith.constant 0 : index
    %c0_52 = arith.constant 0 : index
    %59 = vector.load %arg17[%c0_51, %c0_52] : memref<1x32xf32, #tpu.memory_space<vmem>>, vector<1x32xf32>
    %60 = vector.broadcast %59 : vector<1x32xf32> to vector<16x32xf32>
    %61 = arith.addf %58, %60 : vector<16x32xf32>
    %cst_53 = arith.constant 0.000000e+00 : f32
    %62 = vector.broadcast %cst_53 : f32 to vector<16x32xf32>
    %63 = arith.maximumf %61, %62 : vector<16x32xf32>
    %c0_54 = arith.constant 0 : index
    %c0_55 = arith.constant 0 : index
    %64 = vector.load %arg18[%c0_54, %c0_55] : memref<1x32xf32, #tpu.memory_space<vmem>>, vector<1x32xf32>
    %65 = vector.broadcast %64 : vector<1x32xf32> to vector<16x32xf32>
    %66 = arith.mulf %63, %65 : vector<16x32xf32>
    %c0_56 = arith.constant 0 : index
    %c0_57 = arith.constant 0 : index
    %67 = vector.load %arg19[%c0_56, %c0_57] : memref<1x32xf32, #tpu.memory_space<vmem>>, vector<1x32xf32>
    %68 = vector.broadcast %67 : vector<1x32xf32> to vector<16x32xf32>
    %69 = arith.addf %66, %68 : vector<16x32xf32>
    %c0_58 = arith.constant 0 : index
    %c0_59 = arith.constant 0 : index
    %70 = vector.load %arg20[%c0_58, %c0_59] : memref<2x16xf32, #tpu.memory_space<vmem>>, vector<2x16xf32>
    %cst_60 = arith.constant dense<0.000000e+00> : vector<2x32xf32>
    %71 = tpu.matmul %70, %69, %cst_60 {dimension_numbers = #tpu.dot_dimension_numbers<[1], [0], [0], [1], [0, 0, 1, 1], [], []>} : vector<2x16xf32>, vector<16x32xf32>, vector<2x32xf32> -> vector<2x32xf32>
    %c0_61 = arith.constant 0 : index
    %c0_62 = arith.constant 0 : index
    %72 = vector.load %arg21[%c0_61, %c0_62] : memref<32x32xf32, #tpu.memory_space<vmem>>, vector<32x32xf32>
    %cst_63 = arith.constant dense<0.000000e+00> : vector<2x32xf32>
    %73 = tpu.matmul %71, %72, %cst_63 {dimension_numbers = #tpu.dot_dimension_numbers<[1], [0], [0], [1], [0, 0, 1, 1], [], []>} : vector<2x32xf32>, vector<32x32xf32>, vector<2x32xf32> -> vector<2x32xf32>
    %c0_64 = arith.constant 0 : index
    %c0_65 = arith.constant 0 : index
    %74 = vector.load %arg22[%c0_64, %c0_65] : memref<1x32xf32, #tpu.memory_space<vmem>>, vector<1x32xf32>
    %75 = vector.broadcast %74 : vector<1x32xf32> to vector<2x32xf32>
    %76 = arith.addf %73, %75 : vector<2x32xf32>
    %cst_66 = arith.constant 0.000000e+00 : f32
    %77 = vector.broadcast %cst_66 : f32 to vector<2x32xf32>
    %78 = arith.maximumf %76, %77 : vector<2x32xf32>
    %c0_67 = arith.constant 0 : index
    %c0_68 = arith.constant 0 : index
    %79 = vector.load %arg23[%c0_67, %c0_68] : memref<32x128xf32, #tpu.memory_space<vmem>>, vector<32x128xf32>
    %cst_69 = arith.constant dense<0.000000e+00> : vector<2x128xf32>
    %80 = tpu.matmul %78, %79, %cst_69 {dimension_numbers = #tpu.dot_dimension_numbers<[1], [0], [0], [1], [0, 0, 1, 1], [], []>} : vector<2x32xf32>, vector<32x128xf32>, vector<2x128xf32> -> vector<2x128xf32>
    %c0_70 = arith.constant 0 : index
    %c0_71 = arith.constant 0 : index
    %81 = vector.load %arg24[%c0_70, %c0_71] : memref<1x128xf32, #tpu.memory_space<vmem>>, vector<1x128xf32>
    %82 = vector.broadcast %81 : vector<1x128xf32> to vector<2x128xf32>
    %83 = arith.addf %80, %82 : vector<2x128xf32>
    %c0_72 = arith.constant 0 : index
    %c0_73 = arith.constant 0 : index
    %84 = vector.load %arg25[%c0_72, %c0_73] : memref<2x128xf32, #tpu.memory_space<vmem>>, vector<2x128xf32>
    tpu.vector_store %arg25[%c0_72, %c0_73], %83 {strides = array<i32>} : memref<2x128xf32, #tpu.memory_space<vmem>>, vector<2x128xf32>,
    return
  }
}

</mosaic_0001>

<bundles_post_ra>
// kernel: gin_forward.1
= control target key start
LH: loop header
LB: loop body
LE: loop exit
PB: predicated region body
PF: predicated region fallthrough
CT: control target
= control target key end

     0   :  { %vm84_vm0 = vcmask 130048   ;;  %vm174_vm1 = vcmask 64512   ;;  %vm269_vm2 = vcmask 261120   ;;  %vm1477_vm3 = vmmov 0   ;;  %s1790_s1 = inlined_call_operand.vmem [shape: f32[16,8], index: 1, kind: input, shape index: {}]   ;;  %s1791_s0 = inlined_call_operand.vmem [shape: f32[3,16,16], index: 0, kind: input, shape index: {}]   ;;  %s1792_s2 = inlined_call_operand.vmem [shape: f32[8,32], index: 2, kind: input, shape index: {}]   ;;  %s1793_s4 = inlined_call_operand.vmem [shape: f32[32,32], index: 4, kind: input, shape index: {}]   ;;  %s1794_s3 = inlined_call_operand.vmem [shape: f32[1,32], index: 3, kind: input, shape index: {}]   ;;  %s1795_s5 = inlined_call_operand.vmem [shape: f32[1,32], index: 5, kind: input, shape index: {}]   ;;  %s1796_s6 = inlined_call_operand.vmem [shape: f32[1,32], index: 6, kind: input, shape index: {}]   ;;  %s1797_s7 = inlined_call_operand.vmem [shape: f32[1,32], index: 7, kind: input, shape index: {}]   ;;  %s1798_s8 = inlined_call_operand.vmem [shape: f32[32,32], index: 8, kind: input, shape index: {}]   ;;  %s1799_s10 = inlined_call_operand.vmem [shape: f32[32,32], index: 10, kind: input, shape index: {}]   ;;  %s1800_s9 = inlined_call_operand.vmem [shape: f32[1,32], index: 9, kind: input, shape index: {}]   ;;  %s1801_s14 = inlined_call_operand.vmem [shape: f32[32,32], index: 14, kind: input, shape index: {}]   ;;  %s1802_s11 = inlined_call_operand.vmem [shape: f32[1,32], index: 11, kind: input, shape index: {}]   ;;  %s1803_s12 = inlined_call_operand.vmem [shape: f32[1,32], index: 12, kind: input, shape index: {}]   ;;  %s1804_s13 = inlined_call_operand.vmem [shape: f32[1,32], index: 13, kind: input, shape index: {}]   ;;  %s1805_s16 = inlined_call_operand.vmem [shape: f32[32,32], index: 16, kind: input, shape index: {}]   ;;  %s1806_s15 = inlined_call_operand.vmem [shape: f32[1,32], index: 15, kind: input, shape index: {}]   ;;  %s1807_s21 = inlined_call_operand.vmem [shape: f32[32,32], index: 21, kind: input, shape index: {}]   ;;  %s1808_s17 = inlined_call_operand.vmem [shape: f32[1,32], index: 17, kind: input, shape index: {}]   ;;  %s1809_s18 = inlined_call_operand.vmem [shape: f32[1,32], index: 18, kind: input, shape index: {}]   ;;  %s1810_s19 = inlined_call_operand.vmem [shape: f32[1,32], index: 19, kind: input, shape index: {}]   ;;  %s1811_s20 = inlined_call_operand.vmem [shape: f32[2,16], index: 20, kind: input, shape index: {}]   ;;  %s1812_s23 = inlined_call_operand.vmem [shape: f32[32,128], index: 23, kind: input, shape index: {}]   ;;  %s1813_s22 = inlined_call_operand.vmem [shape: f32[1,32], index: 22, kind: input, shape index: {}]   ;;  %s1814_s24 = inlined_call_operand.vmem [shape: f32[1,128], index: 24, kind: input, shape index: {}]   ;;  %s1815_s25 = inlined_call_operand.vmem [shape: f32[2,128], index: 25, kind: output, shape index: {}]  }
   0x1   :  { %1821 = sst [smem:[#allocation2_spill]] %s1790_s1  ;;  %v1213_v51 = vld [vmem:[%s1800_s9] ss:$0 sm:$0xff]  ;;  %v746_v60 = vld [vmem:[%s1801_s14 + $0x8] sm:$0xff]  ;;  %v747_v61 = vld [vmem:[%s1801_s14 + $0x10] sm:$0xff] }
   0x2   :  { %1822 = sst [smem:[#allocation3_spill]] %s1791_s0  ;;  %v745_v59 = vld [vmem:[%s1801_s14] sm:$0xff]  ;;  %v748_v63 = vld [vmem:[%s1801_s14 + $0x18] sm:$0xff] }
   0x3   :  { %1823 = sst [smem:[#allocation4_spill]] %s1792_s2  ;;  %s1832_s0 = sld [smem:[#allocation3_spill]]  ;;  %v1442_v62 = vpack.c.bf16 %v746_v60, %v745_v59  ;;  %v1112_v59 = vld [vmem:[%s1812_s23 + $0x10] sm:$0xff]  ;;  %v1113_v60 = vld [vmem:[%s1812_s23 + $0x18] sm:$0xff] }
   0x4   :  { %1824 = sst [smem:[#allocation5_spill]] %s1793_s4 }
   0x5   :  { %1825 = sst [smem:[#allocation6_spill]] %s1794_s3  ;;  %s1834_s29 = sld [smem:[#allocation5_spill]] }
   0x6   :  { %1826 = sst [smem:[#allocation7_spill]] %s1795_s5  ;;  %s1835_s3 = sld [smem:[#allocation6_spill]] }
   0x7   :  { %1827 = sst [smem:[#allocation8_spill]] %s1796_s6  ;;  %s1831_s6 = sld [smem:[#allocation2_spill]] }
   0x8   :  { %1828 = sst [smem:[#allocation9_spill]] %s1797_s7  ;;  %s1837_s30 = sld [smem:[#allocation8_spill]] }
   0x9   :  { %1829 = sst [smem:[#allocation10_spill]] %s1798_s8  ;;  %v82_v2 = vld [vmem:[%s1832_s0] sm:$0xff]  ;;  %v83_v4 = vld [vmem:[%s1832_s0 + $0x8] sm:$0xff]  ;;  %v1209_v21 = vld [vmem:[%s1832_s0 + $0x10] sm:$0xff]  ;;  %s1838_s26 = sld [smem:[#allocation9_spill]] }
   0xa   :  { %1830 = sst [smem:[#allocation11_spill]] %s1799_s10  ;;  %1300 = vmatprep.mubr.msk.f32.mxu0 %vm84_vm0, %v82_v2  ;;  %s1833_s10 = sld [smem:[#allocation4_spill]]  ;;  %v1210_v41 = vld [vmem:[%s1832_s0 + $0x18] sm:$0xff]  ;;  %v1221_v58 = vld [vmem:[%s1832_s0 + $0x20] sm:$0xff] }
   0xb   :  { %v258_v6 = vld [vmem:[%s1834_s29] sm:$0xff]  ;;  %v259_v7 = vld [vmem:[%s1834_s29 + $0x8] sm:$0xff]  ;;  %v260_v11 = vld [vmem:[%s1834_s29 + $0x10] sm:$0xff] }
   0xc   :  { %v1410_v8 = vpack.c.bf16 %v259_v7, %v258_v6  ;;  %v261_v12 = vld [vmem:[%s1834_s29 + $0x18] sm:$0xff]  ;;  %v1201_v14 = vld [vmem:[%s1835_s3] ss:$0 sm:$0xff]  ;;  %s1836_s29 = sld [smem:[#allocation7_spill]]  ;;  %s1839_s3 = sld [smem:[#allocation10_spill]] }
   0xd   :  { %v80_v0 = vld [vmem:[%s1831_s6] sm:$0xff]  ;;  %v81_v1 = vld [vmem:[%s1831_s6 + $0x8] sm:$0xff]  ;;  %v1414_v13 = vpack.c.bf16 %v261_v12, %v260_v11 }
   0xe   :  { %v1406_v3 = vpack.c.bf16 %v81_v1, %v80_v0  ;;  %v1207_v26 = vld [vmem:[%s1837_s30] ss:$0 sm:$0xff]  ;;  %v1446_v0 = vpack.c.bf16 %v748_v63, %v747_v61  ;;  %v1471_v61 = vpack.c.bf16 %v1113_v60, %v1112_v59 }
   0xf   :  { %v1208_v29 = vld [vmem:[%s1838_s26] ss:$0 sm:$0xff]  ;;  %s1840_s26 = sld [smem:[#allocation11_spill]] }
  0x10   :  { %1407 = vmatprep.subr.bf16.mxu0 %v1406_v3  ;;  %v166_v5 = vld [vmem:[%s1833_s10] sm:$0xff] }
  0x11   :  { %1409 = vmatpush3.bf16.msra.mxu0 %v1406_v3  ;;  %1303 = vmatprep.subr.mxu1 %v166_v5  ;;  %v1216_v1 = vld [vmem:[%s1802_s11] ss:$0 sm:$0xff] }
  0x12   :  { %1304 = vmatpush3.msra.mxu1 %v166_v5  ;;  %v1204_v22 = vld [vmem:[%s1836_s29] ss:$0 sm:$0xff]  ;;  %v456_v35 = vld [vmem:[%s1839_s3 + $0x8] sm:$0xff]  ;;  %v457_v39 = vld [vmem:[%s1839_s3 + $0x10] sm:$0xff] }
  0x13   :  { %1411 = vmatprep.subr.bf16.mxu1 %v1410_v8  ;;  %v455_v34 = vld [vmem:[%s1839_s3] sm:$0xff]  ;;  %v458_v40 = vld [vmem:[%s1839_s3 + $0x18] sm:$0xff] }
  0x14   :  { %1301 = vmatmul.mubr.msk.f32.vlgmr.msra.gmra.mrb[0].mxu0 %vm84_vm0, %v83_v4  ;;  %v1422_v38 = vpack.c.bf16 %v456_v35, %v455_v34  ;;  %v1426_v42 = vpack.c.bf16 %v458_v40, %v457_v39  ;;  %v1219_v5 = vld [vmem:[%s1803_s12] ss:$0 sm:$0xff]  ;;  %v1026_v34 = vld [vmem:[%s1807_s21 + $0x8] sm:$0xff]  ;;  %v1027_v35 = vld [vmem:[%s1807_s21 + $0x10] sm:$0xff] }
  0x15   :  { %1323 = vmatprep.mubr.msk.f32.mxu0 %vm84_vm0, %v1209_v21  ;;  %v549_v43 = vld [vmem:[%s1840_s26] sm:$0xff]  ;;  %v550_v44 = vld [vmem:[%s1840_s26 + $0x8] sm:$0xff]  ;;  %v551_v48 = vld [vmem:[%s1840_s26 + $0x10] sm:$0xff] }
  0x16   :  { %v1430_v45 = vpack.c.bf16 %v550_v44, %v549_v43  ;;  %v552_v49 = vld [vmem:[%s1840_s26 + $0x18] sm:$0xff]  ;;  %v841_v21 = vld [vmem:[%s1805_s16 + $0x10] sm:$0xff]  ;;  %v1228_v39 = vld [vmem:[%s1808_s17] ss:$0 sm:$0xff] }
  0x17   :  { %v1434_v50 = vpack.c.bf16 %v552_v49, %v551_v48  ;;  %v1231_v43 = vld [vmem:[%s1809_s18] ss:$0 sm:$0xff] }
  0xe7   :  { %v1302_v9 = vpop.f32.mrb[0].mxu0 }
  0xe8   :  { %v157_v10 = vpop.f32.mrb[1].mxu0 }
  0xe9   :  { %1305 = vmatprep.mubr.msk.f32.mxu1 %vm174_vm1, %v157_v10 }
  0xea   :  { %1306 = vmatmul.mubr.msk.f32.vlgmr.msra.gmra.mrb[0].mxu1 %vm174_vm1, %v1302_v9 }
  0xeb   :  { %1413 = vmatpush3.bf16.msra.mxu1 %v1410_v8  ;;  %v1220_v8 = vld [vmem:[%s1804_s13] ss:$0 sm:$0xff] }
  0xec   :  { %1415 = vmatprep.subr.bf16.mxu1 %v1414_v13 }
  0xef   :  { %1417 = vmatpush3.bf16.msra.mxu1 %v1414_v13 }
  0xf0   :  { %1431 = vmatprep.subr.bf16.mxu1 %v1430_v45 }
 0x1bd   :  { %v1307_v15 = vpop.f32.mrb[0].mxu1 }
 0x1be   :  { %v253_v16 = vadd.f32 %v1307_v15, %v1201_v14  ;;  %v247_v17 = vpop.f32.mrb[1].mxu1  ;;  %v1222_v15 = vld [vmem:[%s1832_s0 + $0x28] sm:$0xff] }
 0x1bf   :  { %v248_v18 = vadd.f32 %v1201_v14, %v247_v17  ;;  %v840_v17 = vld [vmem:[%s1805_s16 + $0x8] sm:$0xff] }
 0x1c0   :  { %v257_v20 = vmax.f32 %v253_v16, 0.0  ;;  %v839_v16 = vld [vmem:[%s1805_s16] sm:$0xff] }
 0x1c1   :  { %v256_v19 = vmax.f32 %v248_v18, 0.0  ;;  %v1450_v18 = vpack.c.bf16 %v840_v17, %v839_v16 }
 0x1c3   :  { %1316 = vmatprep.mubr.msk.f32.mxu1 %vm269_vm2, %v256_v19 }
 0x1c4   :  { %1317 = vmatmul.mubr.msk.f32.vlgmr.msra.gmra.mrb[2].mxu1 %vm269_vm2, %v257_v20 }
 0x1c5   :  { %1433 = vmatpush3.bf16.msra.mxu1 %v1430_v45 }
 0x1c6   :  { %1435 = vmatprep.subr.bf16.mxu1 %v1434_v50 }
 0x1c9   :  { %1437 = vmatpush3.bf16.msra.mxu1 %v1434_v50 }
 0x1ca   :  { %1443 = vmatprep.subr.bf16.mxu1 %v1442_v62 }
 0x297   :  { %v1318_v23 = vpop.f32.mrb[2].mxu1 }
 0x298   :  { %v348_v24 = vadd.f32 %v1318_v23, %v1204_v22  ;;  %v342_v25 = vpop.f32.mrb[3].mxu1 }
 0x299   :  { %v343_v27 = vadd.f32 %v1204_v22, %v342_v25  ;;  %v842_v22 = vld [vmem:[%s1805_s16 + $0x18] sm:$0xff] }
 0x29a   :  { %v352_v28 = vmax.f32 %v348_v24, 0.0  ;;  %v1454_v23 = vpack.c.bf16 %v842_v22, %v841_v21  ;;  %v1225_v24 = vld [vmem:[%s1806_s15] ss:$0 sm:$0xff] }
 0x29b   :  { %v351_v30 = vmax.f32 %v343_v27, 0.0 }
 0x29c   :  { %v361_v31 = vmul.f32 %v1207_v26, %v352_v28 }
 0x29d   :  { %v360_v32 = vmul.f32 %v1207_v26, %v351_v30 }
 0x29e   :  { %v370_v33 = vadd.f32 %v1208_v29, %v361_v31  ;;  %v1476_v31 = vmov 0.0|0.0  }
 0x29f   :  { %v369_v36 = vadd.f32 %v1208_v29, %v360_v32  ;;  %v1478_v32 = vmov 0.0  }
 0x2a1   :  { %v1418_v37 = vpack.c.bf16 %v370_v33, %v369_v36  ;;  %v1025_v33 = vld [vmem:[%s1807_s21] sm:$0xff] }
 0x2a2   :  { %v1462_v36 = vpack.c.bf16 %v1026_v34, %v1025_v33 }
 0x2a3   :  { %1419 = vmatprep.subr.bf16.mxu0 %v1418_v37 }
 0x2a4   :  { %1421 = vmatpush3.bf16.msra.mxu0 %v1418_v37  ;;  %v1028_v37 = vld [vmem:[%s1807_s21 + $0x18] sm:$0xff] }
 0x2a5   :  { %1423 = vmatprep.subr.bf16.mxu0 %v1422_v38 }
 0x2a7   :  { %1324 = vmatmul.mubr.msk.f32.vlgmr.msra.gmra.mrb[2].mxu0 %vm84_vm0, %v1210_v41 }
 0x2a8   :  { %1425 = vmatpush3.bf16.msra.mxu0 %v1422_v38  ;;  %v1465_v38 = vpack.c.bf16 %v1028_v37, %v1027_v35 }
 0x2a9   :  { %1427 = vmatprep.subr.bf16.mxu0 %v1426_v42 }
 0x2ac   :  { %1429 = vmatpush3.bf16.msra.mxu0 %v1426_v42 }
 0x37a   :  { %v1325_v46 = vpop.f32.mrb[2].mxu0 }
 0x37b   :  { %v446_v47 = vpop.f32.mrb[3].mxu0 }
 0x37c   :  { %1334 = vmatprep.mubr.msk.f32.mxu0 %vm269_vm2, %v446_v47 }
 0x37d   :  { %1335 = vmatmul.mubr.msk.f32.vlgmr.msra.gmra.mrb[4].mxu0 %vm269_vm2, %v1325_v46  ;;  %v1232_v46 = vld [vmem:[%s1810_s19] ss:$0 sm:$0xff] }
 0x37e   :  { %1352 = vmatprep.mubr.msk.f32.mxu0 %vm84_vm0, %v1221_v58 }
 0x450   :  { %v1336_v52 = vpop.f32.mrb[4].mxu0 }
 0x451   :  { %v544_v53 = vadd.f32 %v1336_v52, %v1213_v51  ;;  %v538_v54 = vpop.f32.mrb[5].mxu0 }
 0x452   :  { %v539_v55 = vadd.f32 %v1213_v51, %v538_v54  ;;  %v1110_v54 = vld [vmem:[%s1812_s23] sm:$0xff] }
 0x453   :  { %v548_v57 = vmax.f32 %v544_v53, 0.0  ;;  %v951_v53 = vld [vmem:[%s1811_s20] sm:$0x3] }
 0x454   :  { %v547_v56 = vmax.f32 %v539_v55, 0.0  ;;  %v1111_v55 = vld [vmem:[%s1812_s23 + $0x8] sm:$0xff] }
 0x456   :  { %1345 = vmatprep.mubr.msk.f32.mxu1 %vm269_vm2, %v547_v56  ;;  %v1468_v56 = vpack.c.bf16 %v1111_v55, %v1110_v54 }
 0x457   :  { %1346 = vmatmul.mubr.msk.f32.vlgmr.msra.gmra.mrb[4].mxu1 %vm269_vm2, %v548_v57 }
 0x458   :  { %1445 = vmatpush3.bf16.msra.mxu1 %v1442_v62  ;;  %v1234_v62 = vld [vmem:[%s1813_s22] ss:$0 sm:$0xff] }
 0x459   :  { %1447 = vmatprep.subr.bf16.mxu1 %v1446_v0 }
 0x45c   :  { %1449 = vmatpush3.bf16.msra.mxu1 %v1446_v0 }
 0x45d   :  { %1458 = vmatprep.subr.bf16.mxu1 %v1476_v31 }
 0x52a   :  { %v1347_v2 = vpop.f32.mrb[4].mxu1 }
 0x52b   :  { %v638_v3 = vadd.f32 %v1347_v2, %v1216_v1  ;;  %v632_v4 = vpop.f32.mrb[5].mxu1 }
 0x52c   :  { %v633_v6 = vadd.f32 %v1216_v1, %v632_v4 }
 0x52d   :  { %v642_v7 = vmax.f32 %v638_v3, 0.0  ;;  %v1236_v3 = vld [vmem:[%s1814_s24] ss:$0 sm:$0xff] }
 0x52e   :  { %v641_v9 = vmax.f32 %v633_v6, 0.0 }
 0x52f   :  { %v651_v10 = vmul.f32 %v1219_v5, %v642_v7 }
 0x530   :  { %v650_v11 = vmul.f32 %v1219_v5, %v641_v9 }
 0x531   :  { %v660_v12 = vadd.f32 %v1220_v8, %v651_v10 }
 0x532   :  { %v659_v13 = vadd.f32 %v1220_v8, %v650_v11 }
 0x534   :  { %v1438_v14 = vpack.c.bf16 %v660_v12, %v659_v13 }
 0x536   :  { %1439 = vmatprep.subr.bf16.mxu0 %v1438_v14 }
 0x537   :  { %1441 = vmatpush3.bf16.msra.mxu0 %v1438_v14 }
 0x538   :  { %1451 = vmatprep.subr.bf16.mxu0 %v1450_v18 }
 0x53a   :  { %1353 = vmatmul.mubr.msk.f32.vlgmr.msra.gmra.mrb[6].mxu0 %vm84_vm0, %v1222_v15 }
 0x53b   :  { %1453 = vmatpush3.bf16.msra.mxu0 %v1450_v18 }
 0x53c   :  { %1455 = vmatprep.subr.bf16.mxu0 %v1454_v23 }
 0x53f   :  { %1457 = vmatpush3.bf16.msra.mxu0 %v1454_v23 }
 0x540   :  { %1461 = vmatprep.subr.bf16.mxu0 %v1476_v31 }
 0x60d   :  { %v1354_v19 = vpop.f32.mrb[6].mxu0 }
 0x60e   :  { %v736_v20 = vpop.f32.mrb[7].mxu0 }
 0x60f   :  { %1363 = vmatprep.mubr.msk.f32.mxu1 %vm269_vm2, %v736_v20 }
 0x610   :  { %1364 = vmatmul.mubr.msk.f32.vlgmr.msra.gmra.mrb[6].mxu1 %vm269_vm2, %v1354_v19 }
 0x611   :  { %1381 = vmatprep.mubr.msk.f32.mxu1 %vm1477_vm3, %v1478_v32 }
 0x6e3   :  { %v1365_v25 = vpop.f32.mrb[6].mxu1 }
 0x6e4   :  { %v834_v26 = vadd.f32 %v1365_v25, %v1225_v24  ;;  %v828_v27 = vpop.f32.mrb[7].mxu1 }
 0x6e5   :  { %v829_v28 = vadd.f32 %v1225_v24, %v828_v27 }
 0x6e6   :  { %v838_v30 = vmax.f32 %v834_v26, 0.0 }
 0x6e7   :  { %v837_v29 = vmax.f32 %v829_v28, 0.0 }
 0x6e9   :  { %1374 = vmatprep.mubr.msk.f32.mxu0 %vm269_vm2, %v837_v29 }
 0x6ea   :  { %1375 = vmatmul.mubr.msk.f32.vlgmr.msra.gmra.mrb[8].mxu0 %vm269_vm2, %v838_v30 }
 0x6eb   :  { %1392 = vmatprep.mubr.msk.f32.mxu0 %vm1477_vm3, %v1478_v32  ;;  %1463 = vmatpush3.bf16.msra.mxu0 %v1462_v36 }
 0x6ec   :  { %1464 = vmatprep.subr.bf16.mxu0 %v1476_v31 }
 0x6ef   :  { %1466 = vmatpush3.bf16.msra.mxu0 %v1465_v38 }
 0x7bd   :  { %v1376_v40 = vpop.f32.mrb[8].mxu0 }
 0x7be   :  { %v928_v41 = vadd.f32 %v1376_v40, %v1228_v39  ;;  %v922_v42 = vpop.f32.mrb[9].mxu0 }
 0x7bf   :  { %v923_v44 = vadd.f32 %v1228_v39, %v922_v42 }
 0x7c0   :  { %v932_v45 = vmax.f32 %v928_v41, 0.0 }
 0x7c1   :  { %v931_v47 = vmax.f32 %v923_v44, 0.0 }
 0x7c2   :  { %v941_v48 = vmul.f32 %v1231_v43, %v932_v45 }
 0x7c3   :  { %v940_v49 = vmul.f32 %v1231_v43, %v931_v47 }
 0x7c4   :  { %v950_v50 = vadd.f32 %v1232_v46, %v941_v48 }
 0x7c5   :  { %v949_v51 = vadd.f32 %v1232_v46, %v940_v49 }
 0x7c7   :  { %v1459_v52 = vpack.c.bf16 %v950_v50, %v949_v51 }
 0x7c9   :  { %1460 = vmatpush3.bf16.msra.mxu1 %v1459_v52 }
 0x7ca   :  { %1467 = vmatprep.subr.bf16.mxu1 %v1476_v31 }
 0x7cc   :  { %1382 = vmatmul.mubr.msk.f32.vlgmr.msra.gmra.mrb[8].mxu1 %vm84_vm0, %v951_v53 }
 0x7cd   :  { %1403 = vmatprep.mubr.msk.f32.mxu1 %vm1477_vm3, %v1478_v32  ;;  %1469 = vmatpush3.bf16.msra.mxu1 %v1468_v56 }
 0x7ce   :  { %1470 = vmatprep.subr.bf16.mxu1 %v1476_v31 }
 0x7d1   :  { %1472 = vmatpush3.bf16.msra.mxu1 %v1471_v61 }
 0x89f   :  { %v1021_v57 = vpop.f32.mrb[8].mxu1 }
 0x8a0   :  { %v1383_v58 = vpop.f32.mrb[9].mxu1  ;;  %1393 = vmatmul.mubr.msk.f32.vlgmr.msra.gmra.mrb[10].mxu0 %vm269_vm2, %v1021_v57 }
 0x973   :  { %v1105_v63 = vpop.f32.mrb[10].mxu0 }
 0x974   :  { %v1106_v0 = vadd.f32 %v1234_v62, %v1105_v63  ;;  %v1394_v1 = vpop.f32.mrb[11].mxu0 }
 0x976   :  { %v1109_v2 = vmax.f32 %v1106_v0, 0.0 }
 0x978   :  { %1404 = vmatmul.mubr.msk.f32.vlgmr.msra.gmra.mrb[10].mxu1 %vm269_vm2, %v1109_v2 }
 0xa4b   :  { %v1190_v4 = vpop.f32.mrb[10].mxu1 }
 0xa4c   :  { %v1191_v5 = vadd.f32 %v1236_v3, %v1190_v4  ;;  %v1405_v6 = vpop.f32.mrb[11].mxu1 }
 0xa4e   :  { %1194 = vst [vmem:[%s1815_s25] sm:$0x3] %v1191_v5 }

</bundles_post_ra>
